<compile_context>
chip_gen: v7x
topology: tpu7x:2x2x1
jax: 0.10.0
libtpu: 0.0.40
codegen_flags: <defaults>
</compile_context>

<pallas_src>
import jax
import jax.numpy as jnp
from jax.experimental import pallas as pl
from jax.experimental.pallas import tpu as pltpu


# ----------------------------------------------------------------------------
# Kernel
# ----------------------------------------------------------------------------
def _transition_kernel(z_ref, h_ref,
                       wzr_ref, wzz_ref, wzn_ref,
                       whr_ref, whz_ref, whn_ref,
                       br_ref, bz_ref, bin_ref, bhn_ref,
                       out_ref):
    """One batch tile of the fused Linear+GRUCell update.

    z-path weights already contain the folded fz Linear; biases are f32 and
    added after the f32-accumulated matmuls. Gate math is f32 on the VPU/EUP.
    """
    mm_dtype = wzr_ref.dtype                       # matmul operand dtype (bf16)
    h_f32 = h_ref[...].astype(jnp.float32)
    zc = z_ref[...].astype(mm_dtype)
    hc = h_ref[...].astype(mm_dtype)

    # r gate:  sigmoid(z @ Wzr + h @ Whr + b_r)
    g_r = (jnp.dot(zc, wzr_ref[...], preferred_element_type=jnp.float32)
           + jnp.dot(hc, whr_ref[...], preferred_element_type=jnp.float32)
           + br_ref[...])
    # update gate:  sigmoid(z @ Wzz + h @ Whz + b_z)
    g_u = (jnp.dot(zc, wzz_ref[...], preferred_element_type=jnp.float32)
           + jnp.dot(hc, whz_ref[...], preferred_element_type=jnp.float32)
           + bz_ref[...])
    # n gate pieces (hidden part must be gated by r before the tanh)
    g_in = jnp.dot(zc, wzn_ref[...], preferred_element_type=jnp.float32) + bin_ref[...]
    g_hn = jnp.dot(hc, whn_ref[...], preferred_element_type=jnp.float32) + bhn_ref[...]

    r = jax.nn.sigmoid(g_r)
    u = jax.nn.sigmoid(g_u)
    n = jnp.tanh(g_in + r * g_hn)

    out_ref[...] = ((1.0 - u) * n + u * h_f32).astype(out_ref.dtype)


# ----------------------------------------------------------------------------
# Parameter preparation (fold fz into the GRU input path, split per gate,
# cast matmul weights to bf16).  Do this ONCE, reuse across steps.
# ----------------------------------------------------------------------------
def prepare_params(params, *, matmul_dtype=jnp.bfloat16):
    wz = params["wz"].astype(jnp.float32)
    bz = params["bz"].astype(jnp.float32)
    wih = params["wih"].astype(jnp.float32)
    bih = params["bih"].astype(jnp.float32)
    whh = params["whh"].astype(jnp.float32)
    bhh = params["bhh"].astype(jnp.float32)

    H = whh.shape[0]
    # Fold: x = z@Wz + bz ; gi = x@Wih + bih  ==>  gi = z@(Wz@Wih) + (bz@Wih + bih)
    w_zih = wz @ wih                     # (Z, 3H)
    b_zih = bz @ wih + bih               # (1, 3H)

    def gate(a, k):                      # slice gate k along the 3H axis
        return a[:, k * H:(k + 1) * H]

    return {
        # z-path (folded) weights, per gate, lane-aligned (Z, H)
        "wzr": gate(w_zih, 0).astype(matmul_dtype),
        "wzz": gate(w_zih, 1).astype(matmul_dtype),
        "wzn": gate(w_zih, 2).astype(matmul_dtype),
        # h-path weights, per gate (H, H)
        "whr": gate(whh, 0).astype(matmul_dtype),
        "whz": gate(whh, 1).astype(matmul_dtype),
        "whn": gate(whh, 2).astype(matmul_dtype),
        # f32 biases; r/z gate biases are pre-summed (input + hidden)
        "b_r": gate(b_zih, 0) + gate(bhh, 0),
        "b_z": gate(b_zih, 1) + gate(bhh, 1),
        "b_in": gate(b_zih, 2),
        "b_hn": gate(bhh, 2),
    }


# ----------------------------------------------------------------------------
# Wrapper
# ----------------------------------------------------------------------------
def transition_forward(h, z, fused, *, block_b=256):
    """h: (B, H) f32, z: (B, Z) f32, fused = prepare_params(...). Returns (B, H)."""
    B, H = h.shape
    _, Z = z.shape
    out_dtype = h.dtype

    # Batch tiling: single full block if small, else pad B up to a multiple of
    # block_b (block_b is a multiple of 8 -> sublane-aligned f32 tiles).
    if B <= block_b:
        TB, B_pad = B, B
    else:
        TB = block_b
        B_pad = ((B + TB - 1) // TB) * TB
        if B_pad != B:
            pad = B_pad - B
            h = jnp.pad(h, ((0, pad), (0, 0)))
            z = jnp.pad(z, ((0, pad), (0, 0)))
    grid = (B_pad // TB,)

    def batch_spec(d):
        return pl.BlockSpec((TB, d), lambda i: (i, 0))

    def const_spec(shape):
        # Constant index_map: weight/bias tile is loaded once and stays
        # VMEM-resident across the batch grid.
        return pl.BlockSpec(shape, lambda i: (0, 0))

    out = pl.pallas_call(
        _transition_kernel,
        out_shape=jax.ShapeDtypeStruct((B_pad, H), out_dtype),
        grid=grid,
        in_specs=[
            batch_spec(Z),             # z tile
            batch_spec(H),             # h tile
            const_spec((Z, H)),        # wzr
            const_spec((Z, H)),        # wzz
            const_spec((Z, H)),        # wzn
            const_spec((H, H)),        # whr
            const_spec((H, H)),        # whz
            const_spec((H, H)),        # whn
            const_spec((1, H)),        # b_r
            const_spec((1, H)),        # b_z
            const_spec((1, H)),        # b_in
            const_spec((1, H)),        # b_hn
        ],
        out_specs=batch_spec(H),
        compiler_params=pltpu.CompilerParams(
            # Batch axis is independent -> parallel (sharded across TCs on v7x).
            dimension_semantics=("parallel",),
        ),
    )(z, h,
      fused["wzr"], fused["wzz"], fused["wzn"],
      fused["whr"], fused["whz"], fused["whn"],
      fused["b_r"], fused["b_z"], fused["b_in"], fused["b_hn"])

    return out[:B]


# ----------------------------------------------------------------------------
# Synthetic params + pure-JAX reference (matches PyTorch GRUCell semantics)
# ----------------------------------------------------------------------------
def init_params(key, h_dim, z_dim, dtype=jnp.float32):
    ks = jax.random.split(key, 6)
    s_fz = 1.0 / jnp.sqrt(z_dim)
    s_gru = 1.0 / jnp.sqrt(h_dim)
    return {
        "wz": jax.random.uniform(ks[0], (z_dim, h_dim), dtype, -s_fz, s_fz),
        "bz": jax.random.uniform(ks[1], (1, h_dim), dtype, -s_fz, s_fz),
        "wih": jax.random.uniform(ks[2], (h_dim, 3 * h_dim), dtype, -s_gru, s_gru),
        "bih": jax.random.uniform(ks[3], (1, 3 * h_dim), dtype, -s_gru, s_gru),
        "whh": jax.random.uniform(ks[4], (h_dim, 3 * h_dim), dtype, -s_gru, s_gru),
        "bhh": jax.random.uniform(ks[5], (1, 3 * h_dim), dtype, -s_gru, s_gru),
    }


def transition_reference(h, z, p):
    x = z @ p["wz"] + p["bz"]
    gi = x @ p["wih"] + p["bih"]
    gh = h @ p["whh"] + p["bhh"]
    H = h.shape[1]
    r = jax.nn.sigmoid(gi[:, :H] + gh[:, :H])
    u = jax.nn.sigmoid(gi[:, H:2 * H] + gh[:, H:2 * H])
    n = jnp.tanh(gi[:, 2 * H:] + r * gh[:, 2 * H:])
    return (1.0 - u) * n + u * h


if __name__ == "__main__":
    B, H_DIM, Z_DIM = 8, 32, 16

    key = jax.random.PRNGKey(0)
    k_h, k_z, k_p = jax.random.split(key, 3)

    h = jax.random.normal(k_h, (B, H_DIM), jnp.float32)
    z = jax.random.normal(k_z, (B, Z_DIM), jnp.float32)
    params = init_params(k_p, H_DIM, Z_DIM)

    fused = prepare_params(params)           # fold + split + bf16 cast, once
    h_next = transition_forward(h, z, fused)
    jax.block_until_ready(h_next)

    ref = transition_reference(h, z, params)
    assert h_next.shape == (B, H_DIM)
    # bf16 matmul operands + folded associativity -> relaxed tolerance
    max_err = float(jnp.max(jnp.abs(h_next - ref)))
    assert max_err < 3e-2, f"max abs err {max_err}"

    print("KERNEL_OK")
</pallas_src>

<mosaic_0001>
module attributes {stable_mosaic.version = 11 : i64} {
  func.func @_transition_kernel(%arg0: i32, %arg1: memref<8x16xf32, #tpu.memory_space<vmem>>, %arg2: memref<8x32xf32, #tpu.memory_space<vmem>>, %arg3: memref<16x32xbf16, #tpu.memory_space<vmem>>, %arg4: memref<16x32xbf16, #tpu.memory_space<vmem>>, %arg5: memref<16x32xbf16, #tpu.memory_space<vmem>>, %arg6: memref<32x32xbf16, #tpu.memory_space<vmem>>, %arg7: memref<32x32xbf16, #tpu.memory_space<vmem>>, %arg8: memref<32x32xbf16, #tpu.memory_space<vmem>>, %arg9: memref<1x32xf32, #tpu.memory_space<vmem>>, %arg10: memref<1x32xf32, #tpu.memory_space<vmem>>, %arg11: memref<1x32xf32, #tpu.memory_space<vmem>>, %arg12: memref<1x32xf32, #tpu.memory_space<vmem>>, %arg13: memref<8x32xf32, #tpu.memory_space<vmem>>) attributes {dimension_semantics = [#tpu.dimension_semantics<parallel>], iteration_bounds = array<i64: 1>, scalar_prefetch = 0 : i64, scratch_operands = 0 : i64, tpu.core_type = #tpu.core_type<tc>, window_params = [{transform_indices = @transform_0, window_bounds = array<i64: 8, 16>}, {transform_indices = @transform_1, window_bounds = array<i64: 8, 32>}, {pipeline_mode = #tpu.pipeline_mode<synchronous>, transform_indices = @transform_2, window_bounds = array<i64: 16, 32>}, {pipeline_mode = #tpu.pipeline_mode<synchronous>, transform_indices = @transform_3, window_bounds = array<i64: 16, 32>}, {pipeline_mode = #tpu.pipeline_mode<synchronous>, transform_indices = @transform_4, window_bounds = array<i64: 16, 32>}, {pipeline_mode = #tpu.pipeline_mode<synchronous>, transform_indices = @transform_5, window_bounds = array<i64: 32, 32>}, {pipeline_mode = #tpu.pipeline_mode<synchronous>, transform_indices = @transform_6, window_bounds = array<i64: 32, 32>}, {pipeline_mode = #tpu.pipeline_mode<synchronous>, transform_indices = @transform_7, window_bounds = array<i64: 32, 32>}, {pipeline_mode = #tpu.pipeline_mode<synchronous>, transform_indices = @transform_8, window_bounds = array<i64: 1, 32>}, {pipeline_mode = #tpu.pipeline_mode<synchronous>, transform_indices = @transform_9, window_bounds = array<i64: 1, 32>}, {pipeline_mode = #tpu.pipeline_mode<synchronous>, transform_indices = @transform_10, window_bounds = array<i64: 1, 32>}, {pipeline_mode = #tpu.pipeline_mode<synchronous>, transform_indices = @transform_11, window_bounds = array<i64: 1, 32>}, {transform_indices = @transform_12, window_bounds = array<i64: 8, 32>}]} {
    %c0 = arith.constant 0 : index
    %c0_0 = arith.constant 0 : index
    %0 = vector.load %arg2[%c0, %c0_0] : memref<8x32xf32, #tpu.memory_space<vmem>>, vector<8x32xf32>
    %c0_1 = arith.constant 0 : index
    %c0_2 = arith.constant 0 : index
    %1 = vector.load %arg1[%c0_1, %c0_2] : memref<8x16xf32, #tpu.memory_space<vmem>>, vector<8x16xf32>
    %2 = arith.truncf %1 : vector<8x16xf32> to vector<8x16xbf16>
    %c0_3 = arith.constant 0 : index
    %c0_4 = arith.constant 0 : index
    %3 = vector.load %arg2[%c0_3, %c0_4] : memref<8x32xf32, #tpu.memory_space<vmem>>, vector<8x32xf32>
    %4 = arith.truncf %3 : vector<8x32xf32> to vector<8x32xbf16>
    %c0_5 = arith.constant 0 : index
    %c0_6 = arith.constant 0 : index
    %5 = vector.load %arg3[%c0_5, %c0_6] : memref<16x32xbf16, #tpu.memory_space<vmem>>, vector<16x32xbf16>
    %cst = arith.constant dense<0.000000e+00> : vector<8x32xf32>
    %6 = tpu.matmul %2, %5, %cst {dimension_numbers = #tpu.dot_dimension_numbers<[1], [0], [0], [1], [0, 0, 1, 1], [], []>} : vector<8x16xbf16>, vector<16x32xbf16>, vector<8x32xf32> -> vector<8x32xf32>
    %c0_7 = arith.constant 0 : index
    %c0_8 = arith.constant 0 : index
    %7 = vector.load %arg6[%c0_7, %c0_8] : memref<32x32xbf16, #tpu.memory_space<vmem>>, vector<32x32xbf16>
    %cst_9 = arith.constant dense<0.000000e+00> : vector<8x32xf32>
    %8 = tpu.matmul %4, %7, %cst_9 {dimension_numbers = #tpu.dot_dimension_numbers<[1], [0], [0], [1], [0, 0, 1, 1], [], []>} : vector<8x32xbf16>, vector<32x32xbf16>, vector<8x32xf32> -> vector<8x32xf32>
    %9 = arith.addf %6, %8 : vector<8x32xf32>
    %c0_10 = arith.constant 0 : index
    %c0_11 = arith.constant 0 : index
    %10 = vector.load %arg9[%c0_10, %c0_11] : memref<1x32xf32, #tpu.memory_space<vmem>>, vector<1x32xf32>
    %11 = vector.broadcast %10 : vector<1x32xf32> to vector<8x32xf32>
    %12 = arith.addf %9, %11 : vector<8x32xf32>
    %c0_12 = arith.constant 0 : index
    %c0_13 = arith.constant 0 : index
    %13 = vector.load %arg4[%c0_12, %c0_13] : memref<16x32xbf16, #tpu.memory_space<vmem>>, vector<16x32xbf16>
    %cst_14 = arith.constant dense<0.000000e+00> : vector<8x32xf32>
    %14 = tpu.matmul %2, %13, %cst_14 {dimension_numbers = #tpu.dot_dimension_numbers<[1], [0], [0], [1], [0, 0, 1, 1], [], []>} : vector<8x16xbf16>, vector<16x32xbf16>, vector<8x32xf32> -> vector<8x32xf32>
    %c0_15 = arith.constant 0 : index
    %c0_16 = arith.constant 0 : index
    %15 = vector.load %arg7[%c0_15, %c0_16] : memref<32x32xbf16, #tpu.memory_space<vmem>>, vector<32x32xbf16>
    %cst_17 = arith.constant dense<0.000000e+00> : vector<8x32xf32>
    %16 = tpu.matmul %4, %15, %cst_17 {dimension_numbers = #tpu.dot_dimension_numbers<[1], [0], [0], [1], [0, 0, 1, 1], [], []>} : vector<8x32xbf16>, vector<32x32xbf16>, vector<8x32xf32> -> vector<8x32xf32>
    %17 = arith.addf %14, %16 : vector<8x32xf32>
    %c0_18 = arith.constant 0 : index
    %c0_19 = arith.constant 0 : index
    %18 = vector.load %arg10[%c0_18, %c0_19] : memref<1x32xf32, #tpu.memory_space<vmem>>, vector<1x32xf32>
    %19 = vector.broadcast %18 : vector<1x32xf32> to vector<8x32xf32>
    %20 = arith.addf %17, %19 : vector<8x32xf32>
    %c0_20 = arith.constant 0 : index
    %c0_21 = arith.constant 0 : index
    %21 = vector.load %arg5[%c0_20, %c0_21] : memref<16x32xbf16, #tpu.memory_space<vmem>>, vector<16x32xbf16>
    %cst_22 = arith.constant dense<0.000000e+00> : vector<8x32xf32>
    %22 = tpu.matmul %2, %21, %cst_22 {dimension_numbers = #tpu.dot_dimension_numbers<[1], [0], [0], [1], [0, 0, 1, 1], [], []>} : vector<8x16xbf16>, vector<16x32xbf16>, vector<8x32xf32> -> vector<8x32xf32>
    %c0_23 = arith.constant 0 : index
    %c0_24 = arith.constant 0 : index
    %23 = vector.load %arg11[%c0_23, %c0_24] : memref<1x32xf32, #tpu.memory_space<vmem>>, vector<1x32xf32>
    %24 = vector.broadcast %23 : vector<1x32xf32> to vector<8x32xf32>
    %25 = arith.addf %22, %24 : vector<8x32xf32>
    %c0_25 = arith.constant 0 : index
    %c0_26 = arith.constant 0 : index
    %26 = vector.load %arg8[%c0_25, %c0_26] : memref<32x32xbf16, #tpu.memory_space<vmem>>, vector<32x32xbf16>
    %cst_27 = arith.constant dense<0.000000e+00> : vector<8x32xf32>
    %27 = tpu.matmul %4, %26, %cst_27 {dimension_numbers = #tpu.dot_dimension_numbers<[1], [0], [0], [1], [0, 0, 1, 1], [], []>} : vector<8x32xbf16>, vector<32x32xbf16>, vector<8x32xf32> -> vector<8x32xf32>
    %c0_28 = arith.constant 0 : index
    %c0_29 = arith.constant 0 : index
    %28 = vector.load %arg12[%c0_28, %c0_29] : memref<1x32xf32, #tpu.memory_space<vmem>>, vector<1x32xf32>
    %29 = vector.broadcast %28 : vector<1x32xf32> to vector<8x32xf32>
    %30 = arith.addf %27, %29 : vector<8x32xf32>
    %31 = arith.negf %12 : vector<8x32xf32>
    %32 = math.exp %31 : vector<8x32xf32>
    %cst_30 = arith.constant 1.000000e+00 : f32
    %33 = vector.broadcast %cst_30 : f32 to vector<8x32xf32>
    %34 = arith.addf %33, %32 : vector<8x32xf32>
    %35 = arith.divf %33, %34 : vector<8x32xf32>
    %36 = arith.negf %20 : vector<8x32xf32>
    %37 = math.exp %36 : vector<8x32xf32>
    %cst_31 = arith.constant 1.000000e+00 : f32
    %38 = vector.broadcast %cst_31 : f32 to vector<8x32xf32>
    %39 = arith.addf %38, %37 : vector<8x32xf32>
    %40 = arith.divf %38, %39 : vector<8x32xf32>
    %41 = arith.mulf %35, %30 : vector<8x32xf32>
    %42 = arith.addf %25, %41 : vector<8x32xf32>
    %43 = math.tanh %42 : vector<8x32xf32>
    %cst_32 = arith.constant 1.000000e+00 : f32
    %44 = vector.broadcast %cst_32 : f32 to vector<8x32xf32>
    %45 = arith.subf %44, %40 : vector<8x32xf32>
    %46 = arith.mulf %45, %43 : vector<8x32xf32>
    %47 = arith.mulf %40, %0 : vector<8x32xf32>
    %48 = arith.addf %46, %47 : vector<8x32xf32>
    %c0_33 = arith.constant 0 : index
    %c0_34 = arith.constant 0 : index
    %49 = vector.load %arg13[%c0_33, %c0_34] : memref<8x32xf32, #tpu.memory_space<vmem>>, vector<8x32xf32>
    tpu.vector_store %arg13[%c0_33, %c0_34], %48 {strides = array<i32>} : memref<8x32xf32, #tpu.memory_space<vmem>>, vector<8x32xf32>,
    return
  }
  func.func @transform_0(%arg0: i32) -> (i32, i32) {
    %c0_i32 = arith.constant 0 : i32
    %c0_i32_0 = arith.constant 0 : i32
    return %arg0, %c0_i32 : i32, i32
  }
  func.func @transform_1(%arg0: i32) -> (i32, i32) {
    %c0_i32 = arith.constant 0 : i32
    %c0_i32_0 = arith.constant 0 : i32
    return %arg0, %c0_i32 : i32, i32
  }
  func.func @transform_2(%arg0: i32) -> (i32, i32) {
    %c0_i32 = arith.constant 0 : i32
    %c0_i32_0 = arith.constant 0 : i32
    %c0_i32_1 = arith.constant 0 : i32
    return %c0_i32, %c0_i32_0 : i32, i32
  }
  func.func @transform_3(%arg0: i32) -> (i32, i32) {
    %c0_i32 = arith.constant 0 : i32
    %c0_i32_0 = arith.constant 0 : i32
    %c0_i32_1 = arith.constant 0 : i32
    return %c0_i32, %c0_i32_0 : i32, i32
  }
  func.func @transform_4(%arg0: i32) -> (i32, i32) {
    %c0_i32 = arith.constant 0 : i32
    %c0_i32_0 = arith.constant 0 : i32
    %c0_i32_1 = arith.constant 0 : i32
    return %c0_i32, %c0_i32_0 : i32, i32
  }
  func.func @transform_5(%arg0: i32) -> (i32, i32) {
    %c0_i32 = arith.constant 0 : i32
    %c0_i32_0 = arith.constant 0 : i32
    %c0_i32_1 = arith.constant 0 : i32
    return %c0_i32, %c0_i32_0 : i32, i32
  }
  func.func @transform_6(%arg0: i32) -> (i32, i32) {
    %c0_i32 = arith.constant 0 : i32
    %c0_i32_0 = arith.constant 0 : i32
    %c0_i32_1 = arith.constant 0 : i32
    return %c0_i32, %c0_i32_0 : i32, i32
  }
  func.func @transform_7(%arg0: i32) -> (i32, i32) {
    %c0_i32 = arith.constant 0 : i32
    %c0_i32_0 = arith.constant 0 : i32
    %c0_i32_1 = arith.constant 0 : i32
    return %c0_i32, %c0_i32_0 : i32, i32
  }
  func.func @transform_8(%arg0: i32) -> (i32, i32) {
    %c0_i32 = arith.constant 0 : i32
    %c0_i32_0 = arith.constant 0 : i32
    %c0_i32_1 = arith.constant 0 : i32
    return %c0_i32, %c0_i32_0 : i32, i32
  }
  func.func @transform_9(%arg0: i32) -> (i32, i32) {
    %c0_i32 = arith.constant 0 : i32
    %c0_i32_0 = arith.constant 0 : i32
    %c0_i32_1 = arith.constant 0 : i32
    return %c0_i32, %c0_i32_0 : i32, i32
  }
  func.func @transform_10(%arg0: i32) -> (i32, i32) {
    %c0_i32 = arith.constant 0 : i32
    %c0_i32_0 = arith.constant 0 : i32
    %c0_i32_1 = arith.constant 0 : i32
    return %c0_i32, %c0_i32_0 : i32, i32
  }
  func.func @transform_11(%arg0: i32) -> (i32, i32) {
    %c0_i32 = arith.constant 0 : i32
    %c0_i32_0 = arith.constant 0 : i32
    %c0_i32_1 = arith.constant 0 : i32
    return %c0_i32, %c0_i32_0 : i32, i32
  }
  func.func @transform_12(%arg0: i32) -> (i32, i32) {
    %c0_i32 = arith.constant 0 : i32
    %c0_i32_0 = arith.constant 0 : i32
    return %arg0, %c0_i32 : i32, i32
  }
}

</mosaic_0001>

<bundles_post_ra>
// kernel: tpu_custom_call.1
= control target key start
LH: loop header
LB: loop body
LE: loop exit
PB: predicated region body
PF: predicated region fallthrough
CT: control target
= control target key end

     0   :  { %17 = vsyncpa [#allocation3], 0  ;;  %s1045_s0 = inlined_call_operand.hbm [shape: f32[8,16], index: 0, kind: input, shape index: {}]   ;;  %s1046_s1 = inlined_call_operand.hbm [shape: f32[8,32], index: 1, kind: input, shape index: {}]   ;;  %s1047_s2 = inlined_call_operand.hbm [shape: bf16[16,32], index: 2, kind: input, shape index: {}]   ;;  %s1048_s3 = inlined_call_operand.hbm [shape: bf16[16,32], index: 3, kind: input, shape index: {}]   ;;  %s1049_s4 = inlined_call_operand.hbm [shape: bf16[16,32], index: 4, kind: input, shape index: {}]   ;;  %s1050_s5 = inlined_call_operand.vmem [shape: bf16[32,32], index: 5, kind: input, shape index: {}]   ;;  %s1051_s6 = inlined_call_operand.hbm [shape: bf16[32,32], index: 6, kind: input, shape index: {}]   ;;  %s1052_s7 = inlined_call_operand.hbm [shape: bf16[32,32], index: 7, kind: input, shape index: {}]   ;;  %s1053_s8 = inlined_call_operand.vmem [shape: f32[1,32], index: 8, kind: input, shape index: {}]   ;;  %s1054_s9 = inlined_call_operand.vmem [shape: f32[1,32], index: 9, kind: input, shape index: {}]   ;;  %s1055_s10 = inlined_call_operand.vmem [shape: f32[1,32], index: 10, kind: input, shape index: {}]   ;;  %s1056_s11 = inlined_call_operand.vmem [shape: f32[1,32], index: 11, kind: input, shape index: {}]   ;;  %s1057_s12 = inlined_call_operand.hbm [shape: f32[8,32], index: 12, kind: output, shape index: {}]  }
   0x1   :  { %18 = vsyncpa [#allocation6], 0 }
   0x2   :  { %19 = vsyncpa [#allocation9], 0 }
   0x3   :  { %20 = vsyncpa [#allocation12], 0 }
   0x4   :  { %21 = vsyncpa [#allocation4], 0  ;;  %s821_s21 = smov [#allocation5]   ;;  %s635_s25 = scalar_lea.hbm %s1046_s1, 128 }
   0x5   :  { %s38_s22 = sshll.u32 %s821_s21, 4  ;;  %p636_p0 = scmp.ne.s32.totalorder %s1046_s1, %s635_s25  ;;  %s39_s22 = int_to_ptr.vmem [resolvable:$true] %s38_s22 }
   0x6   :  { %p639_p1 = scmp.lt.u32.totalorder %s635_s25, %s1046_s1 }
   0x8   :  { %p641_p2 = pnand %p639_p1, %p636_p0 }
   0xa   :  { %644 = shalt.err (!%p641_p2)
}
   0xb   :  { %s645_s30 = scalar_lea.vmem %s39_s22, 128  ;;  %p650_p4 = scmp.lt.s32.totalorder %s39_s22, %s39_s22 }
   0xc   :  { %p646_p3 = scmp.ne.s32.totalorder %s39_s22, %s645_s30  ;;  %p651_p5 = scmp.lt.s32.totalorder %s645_s30, %s645_s30 }
   0xe   :  { %p652_p6 = por %p651_p5, %p650_p4 }
  0x10   :  { %p653_p7 = pnand %p652_p6, %p646_p3 }
  0x12   :  { %656 = shalt.err (!%p653_p7)
}
  0x13   :  { %41 = dma.hbm_to_vmem [thread:$0]  %s1046_s1, 128, %s39_s22, [#allocation6]  }
  0x14   :  { %s822_s15 = smov [#allocation8]   ;;  %s823_s17 = smov [#allocation11]  }
  0x15   :  { %s59_s16 = sshll.u32 %s822_s15, 4  ;;  %s85_s18 = sshll.u32 %s823_s17, 4  ;;  %s60_s16 = int_to_ptr.vmem [resolvable:$true] %s59_s16  ;;  %s86_s18 = int_to_ptr.vmem [resolvable:$true] %s85_s18 }
  0x16   :  { %s657_s21 = scalar_lea.hbm %s1048_s3, 128 }
  0x17   :  { %p658_p8 = scmp.ne.s32.totalorder %s1048_s3, %s657_s21  ;;  %p661_p9 = scmp.lt.u32.totalorder %s657_s21, %s1048_s3 }
  0x19   :  { %p663_p10 = pnand %p661_p9, %p658_p8 }
  0x1b   :  { %666 = shalt.err (!%p663_p10)
}
  0x1c   :  { %s667_s1 = scalar_lea.vmem %s60_s16, 128  ;;  %p672_p12 = scmp.lt.s32.totalorder %s60_s16, %s60_s16 }
  0x1d   :  { %p668_p11 = scmp.ne.s32.totalorder %s60_s16, %s667_s1  ;;  %p673_p13 = scmp.lt.s32.totalorder %s667_s1, %s667_s1 }
  0x1f   :  { %p674_p0 = por %p673_p13, %p672_p12 }
  0x21   :  { %p675_p1 = pnand %p674_p0, %p668_p11 }
  0x23   :  { %678 = shalt.err (!%p675_p1)
}
  0x24   :  { %s824_s22 = smov 64   ;;  %s825_s27 = smov 4  }
  0x25   :  { %65 = dma.hbm_to_vmem [thread:$0]  %s1048_s3, 128, %s60_s16, [#allocation9], %s824_s22, %s824_s22, %s825_s27  }
  0x26   :  { %s679_s14 = scalar_lea.hbm %s1051_s6, 256 }
  0x27   :  { %p680_p2 = scmp.ne.s32.totalorder %s1051_s6, %s679_s14  ;;  %p683_p3 = scmp.lt.u32.totalorder %s679_s14, %s1051_s6 }
  0x29   :  { %p685_p4 = pnand %p683_p3, %p680_p2 }
  0x2b   :  { %688 = shalt.err (!%p685_p4)
}
  0x2c   :  { %s689_s21 = scalar_lea.vmem %s86_s18, 256  ;;  %p694_p6 = scmp.lt.s32.totalorder %s86_s18, %s86_s18 }
  0x2d   :  { %p690_p5 = scmp.ne.s32.totalorder %s86_s18, %s689_s21  ;;  %p695_p7 = scmp.lt.s32.totalorder %s689_s21, %s689_s21 }
  0x2f   :  { %p696_p8 = por %p695_p7, %p694_p6 }
  0x31   :  { %p697_p9 = pnand %p696_p8, %p690_p5 }
  0x33   :  { %700 = shalt.err (!%p697_p9)
}
  0x34   :  { %91 = dma.hbm_to_vmem [thread:$0]  %s1051_s6, 256, %s86_s18, [#allocation12], %s824_s22, %s824_s22, %s825_s27  }
  0x35   :  { %s826_s23 = smov [#allocation2]   ;;  %s827_s25 = smov [#allocation7]  }
  0x36   :  { %s28_s24 = sshll.u32 %s826_s23, 4  ;;  %s47_s26 = sshll.u32 %s827_s25, 4  ;;  %s29_s24 = int_to_ptr.vmem [resolvable:$true] %s28_s24  ;;  %s48_s26 = int_to_ptr.vmem [resolvable:$true] %s47_s26 }
  0x37   :  { %s701_s29 = scalar_lea.hbm %s1045_s0, 128 }
  0x38   :  { %p702_p10 = scmp.ne.s32.totalorder %s1045_s0, %s701_s29  ;;  %p705_p11 = scmp.lt.u32.totalorder %s701_s29, %s1045_s0 }
  0x3a   :  { %p707_p12 = pnand %p705_p11, %p702_p10 }
  0x3c   :  { %710 = shalt.err (!%p707_p12)
}
  0x3d   :  { %s711_s6 = scalar_lea.vmem %s29_s24, 128  ;;  %p716_p0 = scmp.lt.s32.totalorder %s29_s24, %s29_s24 }
  0x3e   :  { %p712_p13 = scmp.ne.s32.totalorder %s29_s24, %s711_s6  ;;  %p717_p1 = scmp.lt.s32.totalorder %s711_s6, %s711_s6 }
  0x40   :  { %p718_p2 = por %p717_p1, %p716_p0 }
  0x42   :  { %p719_p3 = pnand %p718_p2, %p712_p13 }
  0x44   :  { %722 = shalt.err (!%p719_p3)
}
  0x45   :  { %31 = dma.hbm_to_vmem [thread:$0]  %s1045_s0, 128, %s29_s24, [#allocation3]  }
  0x46   :  { %s723_s21 = scalar_lea.hbm %s1047_s2, 128 }
  0x47   :  { %p724_p4 = scmp.ne.s32.totalorder %s1047_s2, %s723_s21  ;;  %p727_p5 = scmp.lt.u32.totalorder %s723_s21, %s1047_s2 }
  0x49   :  { %p729_p6 = pnand %p727_p5, %p724_p4 }
  0x4b   :  { %732 = shalt.err (!%p729_p6)
}
  0x4c   :  { %s733_s1 = scalar_lea.vmem %s48_s26, 128  ;;  %p738_p8 = scmp.lt.s32.totalorder %s48_s26, %s48_s26 }
  0x4d   :  { %p734_p7 = scmp.ne.s32.totalorder %s48_s26, %s733_s1  ;;  %p739_p9 = scmp.lt.s32.totalorder %s733_s1, %s733_s1 }
  0x4f   :  { %p740_p10 = por %p739_p9, %p738_p8 }
  0x51   :  { %p741_p11 = pnand %p740_p10, %p734_p7 }
  0x53   :  { %744 = shalt.err (!%p741_p11)
}
  0x54   :  { %53 = dma.hbm_to_vmem [thread:$0]  %s1047_s2, 128, %s48_s26, [#allocation6], %s824_s22, %s824_s22, %s825_s27  }
  0x55   :  { %s828_s28 = smov [#allocation10]   ;;  %s829_s30 = smov [#allocation13]  }
  0x56   :  { %s71_s29 = sshll.u32 %s828_s28, 4  ;;  %s97_s13 = sshll.u32 %s829_s30, 4  ;;  %s72_s29 = int_to_ptr.vmem [resolvable:$true] %s71_s29  ;;  %s98_s13 = int_to_ptr.vmem [resolvable:$true] %s97_s13 }
  0x57   :  { %s745_s6 = scalar_lea.hbm %s1049_s4, 128 }
  0x58   :  { %p746_p12 = scmp.ne.s32.totalorder %s1049_s4, %s745_s6  ;;  %p749_p13 = scmp.lt.u32.totalorder %s745_s6, %s1049_s4 }
  0x5a   :  { %p751_p0 = pnand %p749_p13, %p746_p12 }
  0x5c   :  { %754 = shalt.err (!%p751_p0)
}
  0x5d   :  { %s755_s2 = scalar_lea.vmem %s72_s29, 128  ;;  %p760_p2 = scmp.lt.s32.totalorder %s72_s29, %s72_s29 }
  0x5e   :  { %p756_p1 = scmp.ne.s32.totalorder %s72_s29, %s755_s2  ;;  %p761_p3 = scmp.lt.s32.totalorder %s755_s2, %s755_s2 }
  0x60   :  { %p762_p4 = por %p761_p3, %p760_p2 }
  0x62   :  { %p763_p5 = pnand %p762_p4, %p756_p1 }
  0x64   :  { %766 = shalt.err (!%p763_p5)
}
  0x65   :  { %77 = dma.hbm_to_vmem [thread:$0]  %s1049_s4, 128, %s72_s29, [#allocation9], %s824_s22, %s824_s22, %s825_s27  }
  0x66   :  { %s767_s23 = scalar_lea.hbm %s1052_s7, 256 }
  0x67   :  { %p768_p6 = scmp.ne.s32.totalorder %s1052_s7, %s767_s23  ;;  %p771_p7 = scmp.lt.u32.totalorder %s767_s23, %s1052_s7 }
  0x69   :  { %p773_p8 = pnand %p771_p7, %p768_p6 }
  0x6b   :  { %776 = shalt.err (!%p773_p8)
}
  0x6c   :  { %s777_s28 = scalar_lea.vmem %s98_s13, 256  ;;  %p782_p10 = scmp.lt.s32.totalorder %s98_s13, %s98_s13 }
  0x6d   :  { %p778_p9 = scmp.ne.s32.totalorder %s98_s13, %s777_s28  ;;  %p783_p11 = scmp.lt.s32.totalorder %s777_s28, %s777_s28 }
  0x6f   :  { %p784_p12 = por %p783_p11, %p782_p10 }
  0x71   :  { %p785_p13 = pnand %p784_p12, %p778_p9 }
  0x73   :  { %788 = shalt.err (!%p785_p13)
}
  0x74   :  { %103 = dma.hbm_to_vmem [thread:$0]  %s1052_s7, 256, %s98_s13, [#allocation12], %s824_s22, %s824_s22, %s825_s27  }
  0x75   :  { %811 = dma.done.wait [#allocation3], 128  }
  0x76   :  { %812 = vsyncadd [#allocation3], 4294967168 }
  0x77   :  { %813 = dma.done.wait [#allocation6], 256  }
  0x78   :  { %814 = vsyncadd [#allocation6], 4294967040 }
  0x79   :  { %815 = dma.done.wait [#allocation9], 256  }
  0x7a   :  { %816 = vsyncadd [#allocation9], 4294967040 }
  0x7b   :  { %817 = dma.done.wait [#allocation12], 512  }
  0x7c   :  { %818 = vsyncadd [#allocation12], 4294966784  ;;  %v830_v0 = vmov 0.0   ;;  %vm831_vm0 = vmmov 0   ;;  %v616_v1 = vld [vmem:[%s1050_s5] sm:$0xff]   ;;  %v618_v3 = vld [vmem:[%s1050_s5 + $0x8] sm:$0xff]  }
  0x7d   :  { %562 = vmatprep.subr.bf16.mxu0 %v830_v0  ;;  %570 = vmatprep.subr.bf16.mxu1 %v830_v0  ;;  %v617_v2 = vld [vmem:[#allocation7] sm:$0xff]   ;;  %v135_v4 = vld [vmem:[#allocation2] sm:$0xff]  ;;  %vm206_vm1 = vcmask 130048   ;;  %v1005_v5 = vld [vmem:[#allocation5] sm:$0xff]  ;;  %vm156_vm2 = vcmask 261120   ;;  %s832_s17 = smov [#allocation14]  }
  0x7e   :  { %572 = vmatprep.mubr.msk.bf16.mxu1 %vm831_vm0, %v830_v0  ;;  %566 = vmatprep.mubr.msk.bf16.mxu0 %vm831_vm0, %v830_v0  ;;  %v136_v6 = vpack.c.bf16 %v135_v4, %v135_v4  ;;  %v619_v7 = vld [vmem:[#allocation11] sm:$0xff]   ;;  %v137_v8 = vpack.c.bf16 %v1005_v5, %v1005_v5  ;;  %v620_v9 = vld [vmem:[#allocation8] sm:$0xff]   ;;  %v621_v10 = vld [vmem:[#allocation11 + $0x8] sm:$0xff]   ;;  %s514_s19 = sshll.u32 %s832_s17, 4  ;;  %s515_s19 = int_to_ptr.vmem [resolvable:$true] %s514_s19 }
  0x7f   :  { %563 = vmatpush3.bf16.msra.mxu0 %v616_v1  ;;  %571 = vmatpush3.bf16.msra.mxu1 %v617_v2  ;;  %v623_v11 = vld [vmem:[#allocation10] sm:$0xff]   ;;  %v622_v12 = vld [vmem:[#allocation13] sm:$0xff]   ;;  %v531_v18 = vld [vmem:[%s1053_s8] ss:$0 sm:$0xff]  ;;  %p794_p1 = scmp.lt.s32.totalorder %s515_s19, %s515_s19 }
  0x80   :  { %564 = vmatprep.subr.bf16.mxu0 %v830_v0  ;;  %576 = vmatprep.subr.bf16.mxu1 %v830_v0  ;;  %v624_v13 = vld [vmem:[#allocation13 + $0x8] sm:$0xff]   ;;  %v537_v30 = vld [vmem:[%s1054_s9] ss:$0 sm:$0xff] }
  0x81   :  { %v541_v48 = vld [vmem:[%s1056_s11] ss:$0 sm:$0xff] }
  0x82   :  { %573 = vmatmul.mubr.msk.bf16.vlgmr.msra.gmra.mrb[0].mxu1 %vm206_vm1, %v136_v6  ;;  %v538_v51 = vld [vmem:[%s1055_s10] ss:$0 sm:$0xff]  ;;  %s789_s10 = scalar_lea.vmem %s515_s19, 128 }
  0x83   :  { %565 = vmatpush3.bf16.msra.mxu0 %v618_v3  ;;  %577 = vmatpush3.bf16.msra.mxu1 %v619_v7  ;;  %p790_p0 = scmp.ne.s32.totalorder %s515_s19, %s789_s10  ;;  %p795_p2 = scmp.lt.s32.totalorder %s789_s10, %s789_s10 }
  0x84   :  { %584 = vmatprep.subr.bf16.mxu0 %v830_v0  ;;  %578 = vmatprep.subr.bf16.mxu1 %v830_v0 }
  0x85   :  { %580 = vmatprep.mubr.msk.bf16.mxu1 %vm831_vm0, %v830_v0  ;;  %p796_p3 = por %p795_p2, %p794_p1 }
  0x86   :  { %567 = vmatmul.mubr.msk.bf16.vlgmr.msra.gmra.mrb[0].mxu0 %vm156_vm2, %v137_v8 }
  0x87   :  { %585 = vmatpush3.bf16.msra.mxu0 %v620_v9  ;;  %586 = vmatprep.mubr.msk.bf16.mxu0 %vm831_vm0, %v830_v0  ;;  %p797_p4 = pnand %p796_p3, %p790_p0 }
  0x88   :  { %579 = vmatpush3.bf16.msra.mxu1 %v621_v10  ;;  %596 = vmatprep.subr.bf16.mxu0 %v830_v0 }
  0x89   :  { %590 = vmatprep.subr.bf16.mxu1 %v830_v0 }
  0x8b   :  { %581 = vmatmul.mubr.msk.bf16.vlgmr.msra.gmra.mrb[4].mxu1 %vm156_vm2, %v137_v8 }
  0x8c   :  { %591 = vmatpush3.bf16.msra.mxu1 %v623_v11  ;;  %592 = vmatprep.mubr.msk.bf16.mxu1 %vm831_vm0, %v830_v0 }
  0x8e   :  { %587 = vmatmul.mubr.msk.bf16.vlgmr.msra.gmra.mrb[4].mxu0 %vm206_vm1, %v136_v6 }
  0x8f   :  { %597 = vmatpush3.bf16.msra.mxu0 %v622_v12  ;;  %600 = vmatprep.mubr.msk.bf16.mxu0 %vm831_vm0, %v830_v0 }
  0x90   :  { %598 = vmatprep.subr.bf16.mxu0 %v830_v0 }
  0x93   :  { %599 = vmatpush3.bf16.msra.mxu0 %v624_v13  ;;  %593 = vmatmul.mubr.msk.bf16.vlgmr.msra.gmra.mrb[8].mxu1 %vm206_vm1, %v136_v6 }
  0x96   :  { %601 = vmatmul.mubr.msk.bf16.vlgmr.msra.gmra.mrb[8].mxu0 %vm156_vm2, %v137_v8 }
 0x155   :  { %v244_v14 = vpop.f32.mrb[0].mxu1 }
 0x156   :  { %v574_v15 = vpop.f32.mrb[1].mxu1 }
 0x157   :  { %v247_v16 = vpop.f32.mrb[2].mxu1 }
 0x158   :  { %v575_v19 = vpop.f32.mrb[3].mxu1 }
 0x159   :  { %v194_v17 = vpop.f32.mrb[0].mxu0 }
 0x15a   :  { %v245_v20 = vadd.f32 %v244_v14, %v194_v17  ;;  %v568_v21 = vpop.f32.mrb[1].mxu0 }
 0x15b   :  { %v197_v22 = vpop.f32.mrb[2].mxu0 }
 0x15c   :  { %v257_v23 = vadd.f32 %v531_v18, %v245_v20  ;;  %v569_v24 = vpop.f32.mrb[3].mxu0 }
 0x15e   :  { %v545_v25 = vmul.f32 -1.442695, %v257_v23  ;;  %v310_v26 = vpop.f32.mrb[4].mxu1 }
 0x15f   :  { %v582_v27 = vpop.f32.mrb[5].mxu1 }
 0x160   :  { %625 = vpow2.f32 %v545_v25  ;;  %v313_v28 = vpop.f32.mrb[6].mxu1 }
 0x161   :  { %v356_v29 = vpop.f32.mrb[4].mxu0  ;;  %v583_v31 = vpop.f32.mrb[7].mxu1 }
 0x162   :  { %v357_v32 = vadd.f32 %v356_v29, %v310_v26  ;;  %v588_v33 = vpop.f32.mrb[5].mxu0 }
 0x163   :  { %v359_v34 = vpop.f32.mrb[6].mxu0 }
 0x164   :  { %v369_v35 = vadd.f32 %v537_v30, %v357_v32  ;;  %v589_v36 = vpop.f32.mrb[7].mxu0 }
 0x166   :  { %v546_v37 = vmul.f32 -1.442695, %v369_v35  ;;  %v419_v38 = vpop.f32.mrb[8].mxu1 }
 0x167   :  { %v594_v39 = vpop.f32.mrb[9].mxu1  ;;  %v420_v53 = vadd.f32 %v538_v51, %v419_v38 }
 0x168   :  { %627 = vpow2.f32 %v546_v37  ;;  %v422_v40 = vpop.f32.mrb[10].mxu1 }
 0x169   :  { %v482_v41 = vpop.f32.mrb[8].mxu0  ;;  %v595_v42 = vpop.f32.mrb[11].mxu1 }
 0x16a   :  { %v626_v43 = vpop.eup %625  ;;  %v602_v44 = vpop.f32.mrb[9].mxu0  ;;  %v483_v52 = vadd.f32 %v541_v48, %v482_v41 }
 0x16b   :  { %v491_v45 = vadd.f32 1.0, %v626_v43  ;;  %v485_v46 = vpop.f32.mrb[10].mxu0 }
 0x16c   :  { %v603_v47 = vpop.f32.mrb[11].mxu0 }
 0x16d   :  { %629 = vrcp.f32 %v491_v45 }
 0x172   :  { %v628_v49 = vpop.eup %627 }
 0x173   :  { %v497_v50 = vadd.f32 1.0, %v628_v49 }
 0x175   :  { %631 = vrcp.f32 %v497_v50 }
 0x177   :  { %v630_v54 = vpop.eup %629 }
 0x178   :  { %v500_v55 = vmul.f32 %v630_v54, %v483_v52 }
 0x17a   :  { %v501_v56 = vadd.f32 %v500_v55, %v420_v53 }
 0x17c   :  { %633 = vtanh.f32 %v501_v56 }
 0x17f   :  { %v632_v57 = vpop.eup %631 }
 0x180   :  { %v503_v58 = vsub.f32 1.0, %v632_v57  ;;  %v505_v61 = vmul.f32 %v632_v57, %v1005_v5 }
 0x186   :  { %v634_v59 = vpop.eup %633 }
 0x187   :  { %v504_v60 = vmul.f32 %v634_v59, %v503_v58 }
 0x189   :  { %v506_v62 = vadd.f32 %v505_v61, %v504_v60 }
 0x18b   :  { %507 = vst.msk [vmem:[#allocation14] sm:$0xff] %vm156_vm2, %v506_v62 }
 0x18c   :  { %800 = shalt.err (!%p797_p4)
}
 0x18d   :  { %s801_s2 = scalar_lea.hbm %s1057_s12, 128 }
 0x18e   :  { %p802_p5 = scmp.ne.s32.totalorder %s1057_s12, %s801_s2  ;;  %p805_p6 = scmp.lt.u32.totalorder %s801_s2, %s1057_s12 }
 0x190   :  { %p807_p7 = pnand %p805_p6, %p802_p5 }
 0x192   :  { %810 = shalt.err (!%p807_p7)
}
 0x193   :  { %517 = dma.vmem_to_hbm [thread:$0]  %s515_s19, 128, %s1057_s12, [#allocation4]  }
 0x194   :  { %819 = dma.done.wait [#allocation4], 128  }
 0x195   :  { %820 = vsyncadd [#allocation4], 4294967168 }
 0x196   :  { %521 = vsyncpa [#allocation3], 1 }
 0x197   :  { %522 = vsyncpa [#allocation6], 1 }
 0x198   :  { %523 = vsyncpa [#allocation9], 1 }
 0x199   :  { %524 = vsyncpa [#allocation12], 1 }
 0x19a   :  { %525 = vsyncpa [#allocation4], 1 }

</bundles_post_ra>
